<compile_context>
chip_gen: v7x
topology: tpu7x:2x2x1
jax: 0.10.0
libtpu: 0.0.40
codegen_flags: <defaults>
</compile_context>

<pallas_src>
import functools

import jax
import jax.numpy as jnp
from jax.experimental import pallas as pl
from jax.experimental.pallas import tpu as pltpu

_BIG = 1e30  # finite stand-in for +/- inf inside masked reductions


def _triplet_kernel(xr_ref, xc_ref, sqr_ref, sqc_ref, tcol_ref, trow_ref,
                    out_ref, maxap_ref, minan_ref, *, margin):
    j = pl.program_id(1)

    # ---- init running accumulators on the first column tile -------------------
    @pl.when(j == 0)
    def _init():
        maxap_ref[...] = jnp.full_like(maxap_ref, -_BIG)
        minan_ref[...] = jnp.full_like(minan_ref, _BIG)

    # ---- Gram block on the MXU (contract feature axis of both operands, no
    #      transpose materialization), f32 accumulation --------------------------
    gram = jax.lax.dot_general(
        xr_ref[...], xc_ref[...],
        dimension_numbers=(((1,), (1,)), ((), ())),
        preferred_element_type=jnp.float32)

    # Squared pairwise distances.  sqr/sqc were computed from the same rounded
    # features, so dist2 >= 0 up to f32 rounding; padded columns carry a +BIG
    # bias inside sqc, which only matters for the negative min (positives are
    # already excluded there via the sentinel pad label).
    dist2 = (sqr_ref[...] + sqc_ref[...]) - 2.0 * gram          # (tm, tn), f32

    same = tcol_ref[...] == trow_ref[...]                        # (tm, tn)
    pos = jnp.where(same, dist2, -_BIG)
    neg = jnp.where(same, _BIG, dist2)

    maxap_ref[...] = jnp.maximum(maxap_ref[...],
                                 jnp.max(pos, axis=1, keepdims=True))
    minan_ref[...] = jnp.minimum(minan_ref[...],
                                 jnp.min(neg, axis=1, keepdims=True))

    # ---- finalize: sqrt only the two selected (tm, 1) vectors, then hinge ------
    @pl.when(j == pl.num_programs(1) - 1)
    def _final():
        d_ap = jnp.sqrt(jnp.maximum(maxap_ref[...], 1e-12))
        d_an = jnp.sqrt(jnp.maximum(minan_ref[...], 1e-12))
        out_ref[...] = jnp.maximum(d_ap - d_an + margin, 0.0)


def _round_up(x, m):
    return ((x + m - 1) // m) * m


def _make_col_spec(tn, d, n_col_tiles):
    """Column-feature spec; 3-deep buffering when the reduction axis is long."""
    if n_col_tiles >= 3 and hasattr(pl, "Buffered"):
        try:
            return pl.BlockSpec((tn, d), lambda i, j: (j, 0),
                                pipeline_mode=pl.Buffered(3))
        except TypeError:  # pipeline_mode not supported in this jax build
            pass
    return pl.BlockSpec((tn, d), lambda i, j: (j, 0))


def triplet_loss(inputs, targets, margin=0.3, *,
                 gram_dtype=jnp.bfloat16, max_tile=512):
    """inputs: (N, D) features; targets: (N,) integer labels -> scalar loss."""
    n, d = inputs.shape

    # ---- tile selection --------------------------------------------------------
    max_tile = max(128, _round_up(int(max_tile), 128))
    if d >= 4096:
        max_tile = min(max_tile, 256)        # v7x has only 64 MiB physical VMEM
    if n <= max_tile:
        # Small N: pad to a multiple of 16 and split into TWO row tiles so the
        # "parallel" row axis can shard across v7x's two TensorCores.
        n_pad = _round_up(n, 16)
        tm, tn = n_pad // 2, n_pad
    else:
        tm = tn = max_tile
        n_pad = _round_up(n, max_tile)

    # ---- one-time JAX-side preprocessing (cast, norms, padding, masks) ---------
    x = inputs.astype(gram_dtype)
    t = targets.astype(jnp.int32)
    if n_pad != n:
        x = jnp.pad(x, ((0, n_pad - n), (0, 0)))
        pad_label = jnp.min(t) - 1           # guaranteed distinct from real labels
        t = jnp.concatenate([t, jnp.broadcast_to(pad_label, (n_pad - n,))])

    x32 = x.astype(jnp.float32)              # norms from the SAME rounded values
    sq = jnp.sum(x32 * x32, axis=1)          # (n_pad,), f32
    col_bias = jnp.where(jnp.arange(n_pad) < n, 0.0, _BIG)   # excludes padded cols
    sqr = sq.reshape(n_pad, 1)
    sqc = (sq + col_bias).reshape(1, n_pad)
    tcol = t.reshape(n_pad, 1)
    trow = t.reshape(1, n_pad)

    grid = (n_pad // tm, n_pad // tn)
    kernel = functools.partial(_triplet_kernel, margin=float(margin))

    # ---- explicit VMEM budget from the chosen block sizes ----------------------
    itemsize = jnp.dtype(gram_dtype).itemsize
    col_bufs = 3 if grid[1] >= 3 else 2
    vmem_need = (2 * tm * d * itemsize            # row feature double-buffer
                 + col_bufs * tn * d * itemsize   # column feature buffers
                 + 8 * tm * tn * 4                # (tm, tn) f32 temporaries headroom
                 + 12 * max(tm, 8) * 128 * 4)     # padded (tm,1)/(1,tn) blocks, scratch, out
    vmem_limit = int(min(max(vmem_need + (4 << 20), 32 << 20), 64 << 20))

    cost = pl.CostEstimate(
        flops=2 * n_pad * n_pad * d,
        transcendentals=2 * n_pad,
        bytes_accessed=(n_pad * d * itemsize                 # row feature tiles
                        + grid[0] * n_pad * d * itemsize     # column tiles, reread per row tile
                        + grid[0] * 4 * n_pad * 4            # norms + labels rereads
                        + n_pad * 4))                        # per-row hinge output

    hinge = pl.pallas_call(
        kernel,
        out_shape=jax.ShapeDtypeStruct((n_pad, 1), jnp.float32),
        grid_spec=pltpu.PrefetchScalarGridSpec(
            num_scalar_prefetch=0,
            grid=grid,
            in_specs=[
                pl.BlockSpec((tm, d), lambda i, j: (i, 0)),   # row features (gram_dtype)
                _make_col_spec(tn, d, grid[1]),               # column features (gram_dtype)
                pl.BlockSpec((tm, 1), lambda i, j: (i, 0)),   # row squared norms (f32)
                pl.BlockSpec((1, tn), lambda i, j: (0, j)),   # col squared norms + pad bias
                pl.BlockSpec((tm, 1), lambda i, j: (i, 0)),   # row labels
                pl.BlockSpec((1, tn), lambda i, j: (0, j)),   # column labels
            ],
            out_specs=pl.BlockSpec((tm, 1), lambda i, j: (i, 0)),
            scratch_shapes=[pltpu.VMEM((tm, 1), jnp.float32),   # running max_ap (squared)
                            pltpu.VMEM((tm, 1), jnp.float32)],  # running min_an (squared)
        ),
        compiler_params=pltpu.CompilerParams(
            dimension_semantics=("parallel", "arbitrary"),
            vmem_limit_bytes=vmem_limit),
        cost_estimate=cost,
    )(x, x, sqr, sqc, tcol, trow)

    # MarginRankingLoss(margin)(dist_an, dist_ap, y=1) with 'mean' reduction.
    return jnp.sum(hinge[:n, 0]) / n


def _reference_triplet_loss(inputs, targets, margin=0.3):
    """Pure-JAX reference mirroring the PyTorch forward."""
    inputs = inputs.astype(jnp.float32)
    sq = jnp.sum(inputs * inputs, axis=1, keepdims=True)
    dist2 = sq + sq.T - 2.0 * (inputs @ inputs.T)
    dist = jnp.sqrt(jnp.maximum(dist2, 1e-12))
    mask = targets[:, None] == targets[None, :]
    dist_ap = jnp.max(jnp.where(mask, dist, -jnp.inf), axis=1)
    dist_an = jnp.min(jnp.where(mask, jnp.inf, dist), axis=1)
    return jnp.mean(jnp.maximum(dist_ap - dist_an + margin, 0.0))


if __name__ == "__main__":
    key = jax.random.PRNGKey(0)
    k1, k2 = jax.random.split(key)

    # Case 1: tiny single-column-tile case (batch=8, feat_dim=32), 4 ids x 2.
    feats = jax.random.normal(k1, (8, 32), dtype=jnp.float32)
    labels = jnp.array([0, 0, 1, 1, 2, 2, 3, 3], dtype=jnp.int32)

    loss_f32 = jax.block_until_ready(triplet_loss(feats, labels, gram_dtype=jnp.float32))
    loss_bf16 = jax.block_until_ready(triplet_loss(feats, labels))  # bf16 MXU path
    ref = _reference_triplet_loss(feats, labels)
    assert jnp.allclose(loss_f32, ref, atol=1e-5, rtol=1e-5), (loss_f32, ref)
    assert jnp.allclose(loss_bf16, ref, atol=5e-2, rtol=2e-2), (loss_bf16, ref)

    # Case 2: small-branch path with padding (N=300 -> padded, 2 row tiles x 1 col tile).
    feats2 = jax.random.normal(k2, (300, 64), dtype=jnp.float32)
    labels2 = jnp.repeat(jnp.arange(150, dtype=jnp.int32), 2)

    loss2_f32 = jax.block_until_ready(triplet_loss(feats2, labels2, gram_dtype=jnp.float32))
    loss2_bf16 = jax.block_until_ready(triplet_loss(feats2, labels2))
    ref2 = _reference_triplet_loss(feats2, labels2)
    assert jnp.allclose(loss2_f32, ref2, atol=1e-4, rtol=1e-4), (loss2_f32, ref2)
    assert jnp.allclose(loss2_bf16, ref2, atol=5e-2, rtol=2e-2), (loss2_bf16, ref2)

    # Case 3: multi-tile reduction path (max_tile=128 -> 3x3 grid, padding, Buffered(3)).
    loss3_f32 = jax.block_until_ready(
        triplet_loss(feats2, labels2, gram_dtype=jnp.float32, max_tile=128))
    loss3_bf16 = jax.block_until_ready(triplet_loss(feats2, labels2, max_tile=128))
    assert jnp.allclose(loss3_f32, ref2, atol=1e-4, rtol=1e-4), (loss3_f32, ref2)
    assert jnp.allclose(loss3_bf16, ref2, atol=5e-2, rtol=2e-2), (loss3_bf16, ref2)

    print("KERNEL_OK")
</pallas_src>

<mosaic_0001>
module attributes {stable_mosaic.version = 11 : i64} {
  func.func @_triplet_kernel(%arg0: i32, %arg1: i32, %arg2: memref<8x32xf32, #tpu.memory_space<vmem>>, %arg3: memref<16x32xf32, #tpu.memory_space<vmem>>, %arg4: memref<8x1xf32, #tpu.memory_space<vmem>>, %arg5: memref<1x16xf32, #tpu.memory_space<vmem>>, %arg6: memref<8x1xi32, #tpu.memory_space<vmem>>, %arg7: memref<1x16xi32, #tpu.memory_space<vmem>>, %arg8: memref<8x1xf32, #tpu.memory_space<vmem>>, %arg9: memref<8x1xf32, #tpu.memory_space<vmem>>, %arg10: memref<8x1xf32, #tpu.memory_space<vmem>>) attributes {dimension_semantics = [#tpu.dimension_semantics<parallel>, #tpu.dimension_semantics<arbitrary>], iteration_bounds = array<i64: 2, 1>, scalar_prefetch = 0 : i64, scratch_operands = 2 : i64, tpu.core_type = #tpu.core_type<tc>, window_params = [{transform_indices = @transform_0, window_bounds = array<i64: 8, 32>}, {transform_indices = @transform_1, window_bounds = array<i64: 16, 32>}, {transform_indices = @transform_2, window_bounds = array<i64: 8, 1>}, {transform_indices = @transform_3, window_bounds = array<i64: 1, 16>}, {transform_indices = @transform_4, window_bounds = array<i64: 8, 1>}, {transform_indices = @transform_5, window_bounds = array<i64: 1, 16>}, {transform_indices = @transform_6, window_bounds = array<i64: 8, 1>}]} {
    %c0_i32 = arith.constant 0 : i32
    %0 = arith.cmpi eq, %arg1, %c0_i32 : i32
    %1 = arith.extui %0 : i1 to i32
    %c0_i32_0 = arith.constant 0 : i32
    %2 = arith.cmpi ne, %1, %c0_i32_0 : i32
    scf.if %2 {
      %cst_27 = arith.constant -1.000000e+30 : f32
      %36 = vector.broadcast %cst_27 : f32 to vector<8x1xf32>
      %c0_28 = arith.constant 0 : index
      %c0_29 = arith.constant 0 : index
      %37 = vector.load %arg9[%c0_28, %c0_29] : memref<8x1xf32, #tpu.memory_space<vmem>>, vector<8x1xf32>
      tpu.vector_store %arg9[%c0_28, %c0_29], %36 {strides = array<i32>} : memref<8x1xf32, #tpu.memory_space<vmem>>, vector<8x1xf32>,
      %cst_30 = arith.constant 1.000000e+30 : f32
      %38 = vector.broadcast %cst_30 : f32 to vector<8x1xf32>
      %c0_31 = arith.constant 0 : index
      %c0_32 = arith.constant 0 : index
      %39 = vector.load %arg10[%c0_31, %c0_32] : memref<8x1xf32, #tpu.memory_space<vmem>>, vector<8x1xf32>
      tpu.vector_store %arg10[%c0_31, %c0_32], %38 {strides = array<i32>} : memref<8x1xf32, #tpu.memory_space<vmem>>, vector<8x1xf32>,
    } else {
    }
    %c0 = arith.constant 0 : index
    %c0_1 = arith.constant 0 : index
    %3 = vector.load %arg2[%c0, %c0_1] : memref<8x32xf32, #tpu.memory_space<vmem>>, vector<8x32xf32>
    %c0_2 = arith.constant 0 : index
    %c0_3 = arith.constant 0 : index
    %4 = vector.load %arg3[%c0_2, %c0_3] : memref<16x32xf32, #tpu.memory_space<vmem>>, vector<16x32xf32>
    %cst = arith.constant dense<0.000000e+00> : vector<8x16xf32>
    %5 = tpu.matmul %3, %4, %cst {dimension_numbers = #tpu.dot_dimension_numbers<[1], [1], [0], [0], [0, 0, 1, 0], [], []>} : vector<8x32xf32>, vector<16x32xf32>, vector<8x16xf32> -> vector<8x16xf32>
    %c0_4 = arith.constant 0 : index
    %c0_5 = arith.constant 0 : index
    %6 = vector.load %arg4[%c0_4, %c0_5] : memref<8x1xf32, #tpu.memory_space<vmem>>, vector<8x1xf32>
    %c0_6 = arith.constant 0 : index
    %c0_7 = arith.constant 0 : index
    %7 = vector.load %arg5[%c0_6, %c0_7] : memref<1x16xf32, #tpu.memory_space<vmem>>, vector<1x16xf32>
    %8 = vector.broadcast %6 : vector<8x1xf32> to vector<8x16xf32>
    %9 = vector.broadcast %7 : vector<1x16xf32> to vector<8x16xf32>
    %10 = arith.addf %8, %9 : vector<8x16xf32>
    %cst_8 = arith.constant 2.000000e+00 : f32
    %11 = vector.broadcast %cst_8 : f32 to vector<8x16xf32>
    %12 = arith.mulf %11, %5 : vector<8x16xf32>
    %13 = arith.subf %10, %12 : vector<8x16xf32>
    %c0_9 = arith.constant 0 : index
    %c0_10 = arith.constant 0 : index
    %14 = vector.load %arg6[%c0_9, %c0_10] : memref<8x1xi32, #tpu.memory_space<vmem>>, vector<8x1xi32>
    %c0_11 = arith.constant 0 : index
    %c0_12 = arith.constant 0 : index
    %15 = vector.load %arg7[%c0_11, %c0_12] : memref<1x16xi32, #tpu.memory_space<vmem>>, vector<1x16xi32>
    %16 = vector.broadcast %14 : vector<8x1xi32> to vector<8x16xi32>
    %17 = vector.broadcast %15 : vector<1x16xi32> to vector<8x16xi32>
    %18 = arith.cmpi eq, %16, %17 : vector<8x16xi32>
    %cst_13 = arith.constant -1.000000e+30 : f32
    %19 = vector.broadcast %cst_13 : f32 to vector<8x16xf32>
    %20 = arith.select %18, %13, %19 : vector<8x16xi1>, vector<8x16xf32>
    %cst_14 = arith.constant 1.000000e+30 : f32
    %21 = vector.broadcast %cst_14 : f32 to vector<8x16xf32>
    %22 = arith.select %18, %21, %13 : vector<8x16xi1>, vector<8x16xf32>
    %c0_15 = arith.constant 0 : index
    %c0_16 = arith.constant 0 : index
    %23 = vector.load %arg9[%c0_15, %c0_16] : memref<8x1xf32, #tpu.memory_space<vmem>>, vector<8x1xf32>
    %cst_17 = arith.constant dense<0xFF800000> : vector<8xf32>
    %24 = vector.multi_reduction <maximumf>, %20, %cst_17 [1] : vector<8x16xf32> to vector<8xf32>
    %25 = vector.shape_cast %24 : vector<8xf32> to vector<8x1xf32>
    %26 = arith.maximumf %23, %25 : vector<8x1xf32>
    %c0_18 = arith.constant 0 : index
    %c0_19 = arith.constant 0 : index
    %27 = vector.load %arg9[%c0_18, %c0_19] : memref<8x1xf32, #tpu.memory_space<vmem>>, vector<8x1xf32>
    tpu.vector_store %arg9[%c0_18, %c0_19], %26 {strides = array<i32>} : memref<8x1xf32, #tpu.memory_space<vmem>>, vector<8x1xf32>,
    %c0_20 = arith.constant 0 : index
    %c0_21 = arith.constant 0 : index
    %28 = vector.load %arg10[%c0_20, %c0_21] : memref<8x1xf32, #tpu.memory_space<vmem>>, vector<8x1xf32>
    %cst_22 = arith.constant dense<0x7F800000> : vector<8xf32>
    %29 = vector.multi_reduction <minimumf>, %22, %cst_22 [1] : vector<8x16xf32> to vector<8xf32>
    %30 = vector.shape_cast %29 : vector<8xf32> to vector<8x1xf32>
    %31 = arith.minimumf %28, %30 : vector<8x1xf32>
    %c0_23 = arith.constant 0 : index
    %c0_24 = arith.constant 0 : index
    %32 = vector.load %arg10[%c0_23, %c0_24] : memref<8x1xf32, #tpu.memory_space<vmem>>, vector<8x1xf32>
    tpu.vector_store %arg10[%c0_23, %c0_24], %31 {strides = array<i32>} : memref<8x1xf32, #tpu.memory_space<vmem>>, vector<8x1xf32>,
    %c0_i32_25 = arith.constant 0 : i32
    %33 = arith.cmpi eq, %arg1, %c0_i32_25 : i32
    %34 = arith.extui %33 : i1 to i32
    %c0_i32_26 = arith.constant 0 : i32
    %35 = arith.cmpi ne, %34, %c0_i32_26 : i32
    scf.if %35 {
      %c0_27 = arith.constant 0 : index
      %c0_28 = arith.constant 0 : index
      %36 = vector.load %arg9[%c0_27, %c0_28] : memref<8x1xf32, #tpu.memory_space<vmem>>, vector<8x1xf32>
      %cst_29 = arith.constant 9.99999996E-13 : f32
      %37 = vector.broadcast %cst_29 : f32 to vector<8x1xf32>
      %38 = arith.maximumf %36, %37 : vector<8x1xf32>
      %39 = math.sqrt %38 : vector<8x1xf32>
      %c0_30 = arith.constant 0 : index
      %c0_31 = arith.constant 0 : index
      %40 = vector.load %arg10[%c0_30, %c0_31] : memref<8x1xf32, #tpu.memory_space<vmem>>, vector<8x1xf32>
      %cst_32 = arith.constant 9.99999996E-13 : f32
      %41 = vector.broadcast %cst_32 : f32 to vector<8x1xf32>
      %42 = arith.maximumf %40, %41 : vector<8x1xf32>
      %43 = math.sqrt %42 : vector<8x1xf32>
      %44 = arith.subf %39, %43 : vector<8x1xf32>
      %cst_33 = arith.constant 3.000000e-01 : f32
      %45 = vector.broadcast %cst_33 : f32 to vector<8x1xf32>
      %46 = arith.addf %44, %45 : vector<8x1xf32>
      %cst_34 = arith.constant 0.000000e+00 : f32
      %47 = vector.broadcast %cst_34 : f32 to vector<8x1xf32>
      %48 = arith.maximumf %46, %47 : vector<8x1xf32>
      %c0_35 = arith.constant 0 : index
      %c0_36 = arith.constant 0 : index
      %49 = vector.load %arg8[%c0_35, %c0_36] : memref<8x1xf32, #tpu.memory_space<vmem>>, vector<8x1xf32>
      tpu.vector_store %arg8[%c0_35, %c0_36], %48 {strides = array<i32>} : memref<8x1xf32, #tpu.memory_space<vmem>>, vector<8x1xf32>,
    } else {
    }
    return
  }
  func.func @transform_0(%arg0: i32, %arg1: i32) -> (i32, i32) {
    %c0_i32 = arith.constant 0 : i32
    %c0_i32_0 = arith.constant 0 : i32
    return %arg0, %c0_i32 : i32, i32
  }
  func.func @transform_1(%arg0: i32, %arg1: i32) -> (i32, i32) {
    %c0_i32 = arith.constant 0 : i32
    %c0_i32_0 = arith.constant 0 : i32
    return %arg1, %c0_i32 : i32, i32
  }
  func.func @transform_2(%arg0: i32, %arg1: i32) -> (i32, i32) {
    %c0_i32 = arith.constant 0 : i32
    %c0_i32_0 = arith.constant 0 : i32
    return %arg0, %c0_i32 : i32, i32
  }
  func.func @transform_3(%arg0: i32, %arg1: i32) -> (i32, i32) {
    %c0_i32 = arith.constant 0 : i32
    %c0_i32_0 = arith.constant 0 : i32
    return %c0_i32, %arg1 : i32, i32
  }
  func.func @transform_4(%arg0: i32, %arg1: i32) -> (i32, i32) {
    %c0_i32 = arith.constant 0 : i32
    %c0_i32_0 = arith.constant 0 : i32
    return %arg0, %c0_i32 : i32, i32
  }
  func.func @transform_5(%arg0: i32, %arg1: i32) -> (i32, i32) {
    %c0_i32 = arith.constant 0 : i32
    %c0_i32_0 = arith.constant 0 : i32
    return %c0_i32, %arg1 : i32, i32
  }
  func.func @transform_6(%arg0: i32, %arg1: i32) -> (i32, i32) {
    %c0_i32 = arith.constant 0 : i32
    %c0_i32_0 = arith.constant 0 : i32
    return %arg0, %c0_i32 : i32, i32
  }
}

</mosaic_0001>

<bundles_post_ra>
// kernel: tpu_custom_call.1
= control target key start
LH: loop header
LB: loop body
LE: loop exit
PB: predicated region body
PF: predicated region fallthrough
CT: control target
= control target key end

     0   :  { %s758_s21 = smov 0   ;;  %s760_s22 = smov 0   ;;  %s823_s0 = inlined_call_operand.vmem [shape: f32[16,32], index: 0, kind: input, shape index: {}]   ;;  %s824_s1 = inlined_call_operand.vmem [shape: f32[16,32], index: 1, kind: input, shape index: {}]   ;;  %s825_s2 = inlined_call_operand.vmem [shape: f32[16,1], index: 2, kind: input, shape index: {}]   ;;  %s826_s3 = inlined_call_operand.vmem [shape: f32[1,16], index: 3, kind: input, shape index: {}]   ;;  %s827_s4 = inlined_call_operand.vmem [shape: s32[16,1], index: 4, kind: input, shape index: {}]   ;;  %s828_s5 = inlined_call_operand.vmem [shape: s32[1,16], index: 5, kind: input, shape index: {}]   ;;  %s829_s6 = inlined_call_operand.vmem [shape: f32[16,1], index: 6, kind: output, shape index: {}]  }
   0x1   :  { %s762_s23 = smov 0  }
   0x2 LB: > { %s28_s24 = sadd.s32 1, %s711_s22  ;;  %p632_p0 = scmp.ge.s32.totalorder %s715_s23, 1  ;;  %s715_s23 = sphi %s762_s23, %s16_s23   ;;  %s711_s22 = sphi %s760_s22, %s831_s22   ;;  %s707_s21 = sphi %s758_s21, %s830_s21  }
   0x3   : > { %p30_p1 = scmp.ge.s32.totalorder %s28_s24, 2  ;;  %p268_p2 = scmp.lt.s32.totalorder %s715_s23, 3 }
   0x5   : > { %s833_s24 = smov (%p30_p1, %s28_s24), 0  ;;  %p269_p3 = pnand %p632_p0, %p268_p2 }
   0x6   : > { %v351_v0 = vld [vmem:[%s824_s1] sm:$0xff] (!%p269_p3)  ;;  %v352_v1 = vld [vmem:[%s824_s1 + $0x8] sm:$0xff] (!%p269_p3)  ;;  %vm353_vm0 = vcmask (!%p269_p3), 261120   ;;  %v717_v2 = vmov (!%p269_p3), 0.0|0.0   ;;  %vm718_vm2 = vmmov (!%p269_p3), 0   ;;  %v719_v4 = vmov (!%p269_p3), 0.0  }
   0x7   : > { %272 = sbr.rel (%p269_p3) target bundleno = 416 (0x1a0), region = 44  ;;  %654 = vmatprep.subr.bf16.mxu0 (!%p269_p3), %v717_v2  ;;  %v655_v3 = vpack.c.bf16 (!%p269_p3), %v352_v1, %v351_v0  ;;  %vm656_vm1 = vmpackc.low (!%p269_p3), %vm353_vm0, %vm353_vm0  ;;  %651 = vmatprep.mubr.msk.f32.mxu0 (!%p269_p3), %vm718_vm2, %v719_v4  ;;  %p315_p4 = scmp.lt.s32.totalorder (!%p269_p3), %s707_s21, 1  ;;  %v720_v5 = vmov (!%p269_p3), 0   ;;  %vm347_vm3 = vcmask (!%p269_p3), 7168   ;;  %v721_v9 = vmov (!%p269_p3), -1e+30  }
   0x8   : > { %688 = vset.pattern.permute.xlu0 (!%p269_p3), %v720_v5  ;;  %348 = vst.msk [vmem:[#allocation2] sm:$0xff] (!%p269_p3), %vm347_vm3, %v721_v9  ;;  %v640_v11 = vld [vmem:[%s826_s3] ss:$0 sm:$0xff] (!%p269_p3)  ;;  %vm462_vm4 = vcmask (!%p269_p3), 130048   ;;  %v722_v23 = vmov (!%p269_p3), 1e+30  }
   0x9   : > { %657 = vmatpush3.bf16.xpose.msk.msra.mxu0 (!%p269_p3), %vm656_vm1, %v655_v3  ;;  %v641_v14 = vld [vmem:[%s828_s5] ss:$0 sm:$0xff] (!%p269_p3)  ;;  %349 = vst.msk [vmem:[#allocation3] sm:$0xff] (!%p269_p3), %vm347_vm3, %v722_v23 }
   0xe   : > { %s835_s21 = smov (!%p315_p4, %s707_s21), 1 }
   0xf   : > { %s784_s29 = sshll.u32 %s835_s21, 3  ;;  %v461_v24 = vld [vmem:[#allocation2] sm:$0xff] }
  0x10   : > { %s318_s8 = scalar_lea.vmem %s823_s0, %s784_s29  ;;  %s328_s11 = scalar_lea.vmem %s825_s2, %s784_s29  ;;  %v469_v27 = vld [vmem:[#allocation3] sm:$0xff] }
  0x11   : > { %v350_v6 = vld [vmem:[%s318_s8] sm:$0xff]  ;;  %s335_s14 = scalar_lea.vmem %s827_s4, %s784_s29  ;;  %s342_s21 = scalar_lea.vmem %s829_s6, %s784_s29 }
  0x12   : > { %v433_v7 = vld [vmem:[%s328_s11] sm:$0xff]  ;;  %652 = vmatmul.mubr.msk.f32.vlgmr.msra.gmra.mrb[0].mxu0 %vm353_vm0, %v350_v6 }
  0x13   : > { %437 = vperm.xlu0 %688, %v433_v7   ;;  %v449_v8 = vld [vmem:[%s335_s14] sm:$0xff] }
  0x17   : > { %452 = vperm.xlu0 %688, %v449_v8  }
  0x92   : > { %v438_v10 = vpop.permute.xlu0 %437 }
  0x93   : > { %v446_v12 = vadd.f32 %v640_v11, %v438_v10 }
  0x96   : > { %v453_v15 = vpop.permute.xlu0 %452 }
  0x97   : > { %vm458_vm5 = vcmp.eq.s32.totalorder %v453_v15, %v641_v14 }
  0xe5   : > { %v429_v13 = vpop.f32.mrb[0].mxu0 }
  0xe6   : > { %v447_v16 = vmul.f32 2.0, %v429_v13  ;;  %v653_v17 = vpop.f32.mrb[1].mxu0 }
  0xe8   : > { %v448_v18 = vsub.f32 %v446_v12, %v447_v16 }
  0xea   : > { %v459_v19 = vsel %vm458_vm5, %v448_v18, -1e+30  ;;  %v460_v21 = vsel %vm458_vm5, 1e+30, %v448_v18 }
  0xeb   : > { %v463_v20 = vsel %vm462_vm4, %v459_v19, -inf  ;;  %v470_v22 = vsel %vm462_vm4, %v460_v21, inf }
  0xec   : > { %464 = vmax.xlane.f32.xlu1 %v463_v20 }
  0xf0   : > { %471 = vmin.xlane.f32.xlu1 %v470_v22 }
 0x179   : > { %v465_v25 = vpop.xlane.xlu1 %464 }
 0x17a   : > { %v466_v26 = vmax.f32 %v461_v24, %v465_v25 }
 0x17c   : > { %468 = vst.msk [vmem:[#allocation2] sm:$0xff] %vm347_vm3, %v466_v26 }
 0x17d   : > { %v472_v28 = vpop.xlane.xlu1 %471 }
 0x17e   : > { %v473_v29 = vmin.f32 %v469_v27, %v472_v28 }
 0x180   : > { %474 = vst.msk [vmem:[#allocation3] sm:$0xff] %vm347_vm3, %v473_v29 }
 0x183   : > { %v478_v30 = vld [vmem:[#allocation2] sm:$0xff] }
 0x184   : > { %v479_v31 = vmax.f32 %v478_v30, 1e-12 }
 0x186   : > { %689 = vrsqrt.f32 %v479_v31  ;;  %vm482_vm6 = vcmp.eq.f32.partialorder %v479_v31, inf  ;;  %v485_v39 = vand.u32 2147483648, %v479_v31  ;;  %vm484_vm8 = vcmp.eq.f32.partialorder %v479_v31, 0.0 }
 0x187   : > { %v487_v32 = vld [vmem:[#allocation3] sm:$0xff] }
 0x188   : > { %v488_v33 = vmax.f32 %v487_v32, 1e-12 }
 0x18a   : > { %691 = vrsqrt.f32 %v488_v33  ;;  %vm491_vm7 = vcmp.eq.f32.partialorder %v488_v33, inf  ;;  %v494_v40 = vand.u32 2147483648, %v488_v33  ;;  %vm493_vm9 = vcmp.eq.f32.partialorder %v488_v33, 0.0 }
 0x190   : > { %v690_v34 = vpop.eup %689 }
 0x191   : > { %v481_v35 = vmul.f32 %v690_v34, %v479_v31 }
 0x193   : > { %v483_v37 = vsel %vm482_vm6, %v479_v31, %v481_v35 }
 0x194   : > { %v692_v36 = vpop.eup %691  ;;  %v486_v42 = vsel %vm484_vm8, %v485_v39, %v483_v37 }
 0x195   : > { %v490_v38 = vmul.f32 %v692_v36, %v488_v33 }
 0x197   : > { %v492_v41 = vsel %vm491_vm7, %v488_v33, %v490_v38 }
 0x198   : > { %v495_v43 = vsel %vm493_vm9, %v494_v40, %v492_v41 }
 0x199   : > { %v496_v44 = vsub.f32 %v486_v42, %v495_v43 }
 0x19b   : > { %v497_v45 = vadd.f32 0.3, %v496_v44 }
 0x19d   : > { %v498_v46 = vmax.f32 %v497_v45, 0.0 }
 0x19f   : > { %499 = vst.msk [vmem:[%s342_s21] sm:$0xff] %vm347_vm3, %v498_v46 }
 0x1a0 PF: > { %s16_s23 = sadd.s32 1, %s715_s23   ;;  %s830_s21 = smov %s711_s22 }
 0x1a1   : > { %p13_p5 = scmp.ge.s32.totalorder %s16_s23, 4   ;;  %s831_s22 = smov %s833_s24 }
 0x1a3   :  { %15 = sbr.rel (!%p13_p5) target bundleno = 2 (0x2), region = 97 }

</bundles_post_ra>
